<compile_context>
chip_gen: v6e
topology: v6e:2x2x1
jax: 0.10.0
libtpu: 0.0.40
codegen_flags: <defaults>
</compile_context>

<pallas_src>
import math

import jax
import jax.numpy as jnp
from jax import lax
from jax.experimental import pallas as pl
from jax.experimental.pallas import tpu as pltpu

H = 32        # hidden_size
N = 8         # number of graph nodes (rows of adjacency / semantics)
LANES = 128   # lane-dense output width (full vreg lane axis)

# rows of the packed (5, H, H) weight-matrix slab (all stored (in, out))
_W_DIFF, _W_RET, _W_PRED0, _W_BOTH0, _W_SEL0 = range(5)
# rows of the packed (16, H) vector slab
_V_GG, _V_BG, _V_WP1, _V_GB, _V_BB, _V_W1B, _V_GS, _V_BS, _V_W1S = range(9)
# rows of the merged (16, LANES) output slab
_ROW_PRED0 = 0        # rows 0..7 : GCN node scores (broadcast across lanes)
_ROW_BOTH = 8         # both_net logit
_ROW_SEL = 9          # select_net logit
_ROW_LOSS_QT0 = 10    # CrossEntropy loss          (question_type == 0)
_ROW_LOSS_QT1 = 11    # 0.2 * BCEWithLogits(both)  (question_type == 1)
_ROW_LOSS_QT2 = 12    # 0.2 * BCEWithLogits(select)(question_type == 2)


# ------------------------------- kernel helpers ------------------------------
def _gelu(x):
    # exact (erf-based) gelu, bit-matching CogQA/BERT's gelu
    return x * 0.5 * (1.0 + lax.erf(x * (1.0 / math.sqrt(2.0))))


def _layernorm(h, gamma, beta, eps=1e-5):
    mu = jnp.mean(h, axis=-1, keepdims=True)
    var = jnp.mean(jnp.square(h - mu), axis=-1, keepdims=True)
    return (h - mu) * lax.rsqrt(var + eps) * gamma + beta


def _bce_with_logits(z, y):
    # numerically-stable BCE-with-logits (matches torch.nn.functional)
    return jnp.maximum(z, 0.0) - z * y + jnp.log(1.0 + jnp.exp(-jnp.abs(z)))


# ---------------------------------- kernel -----------------------------------
def cognitive_graph_kernel(idx_ref, ans_ref, a_t_ref, x_ref, w_ref, v_ref, out_ref):
    """Fused GCN + both_net + select_net forward + all losses.

    idx_ref : SMEM int32 (3,)  — [answer_id, x_idx, y_idx]
    ans_ref : SMEM f32   (1,)  — BCE target
    a_t_ref : (N, N)   adjacency, already transposed in the wrapper
    x_ref   : (N, H)   node semantics
    w_ref   : (5, H, H) packed (in, out) weight matrices
    v_ref   : (16, H)   packed LayerNorm params + final Linear(H,1) rows
    out_ref : (16, 128) merged lane-dense output slab
    """
    a_t = a_t_ref[...]
    x0 = x_ref[...]

    wd = w_ref[_W_DIFF]
    wr = w_ref[_W_RET]
    wp0 = w_ref[_W_PRED0]
    w0b = w_ref[_W_BOTH0]
    w0s = w_ref[_W_SEL0]

    gg = v_ref[_V_GG:_V_GG + 1, :]
    bg = v_ref[_V_BG:_V_BG + 1, :]
    wp1 = v_ref[_V_WP1:_V_WP1 + 1, :]
    gb = v_ref[_V_GB:_V_GB + 1, :]
    bb = v_ref[_V_BB:_V_BB + 1, :]
    w1b = v_ref[_V_W1B:_V_W1B + 1, :]
    gs = v_ref[_V_GS:_V_GS + 1, :]
    bs = v_ref[_V_BS:_V_BS + 1, :]
    w1s = v_ref[_V_W1S:_V_W1S + 1, :]

    # ---- GCN: layer 1 & 2 (shared diffusion/retained weights, like PyTorch) ----
    x = x0
    d1 = jnp.dot(a_t, _gelu(jnp.dot(x, wd, preferred_element_type=jnp.float32)),
                 preferred_element_type=jnp.float32)
    x = _gelu(jnp.dot(x, wr, preferred_element_type=jnp.float32) + d1)

    d2 = jnp.dot(a_t, _gelu(jnp.dot(x, wd, preferred_element_type=jnp.float32)),
                 preferred_element_type=jnp.float32)
    x = _gelu(jnp.dot(x, wr, preferred_element_type=jnp.float32) + d2)

    # predict MLP: Linear(H,H) -> gelu -> LayerNorm(H) -> Linear(H,1)
    h = _gelu(jnp.dot(x, wp0, preferred_element_type=jnp.float32))
    h = _layernorm(h, gg, bg)
    pred_col = jnp.sum(h * wp1, axis=-1, keepdims=True)              # (N, 1)
    out_ref[0:N, :] = jnp.broadcast_to(pred_col, (N, LANES))         # lane-dense

    # ---- diff_sem = semantics[x_idx] - semantics[y_idx] (computed in-kernel) ----
    xi = idx_ref[1]
    yi = idx_ref[2]
    rows_n1 = lax.broadcasted_iota(jnp.int32, (N, 1), 0)
    x_row = jnp.sum(jnp.where(rows_n1 == xi, x0, 0.0), axis=0, keepdims=True)  # (1,H)
    y_row = jnp.sum(jnp.where(rows_n1 == yi, x0, 0.0), axis=0, keepdims=True)
    diff = x_row - y_row

    # ---- both_net / select_net heads ----
    hb = _gelu(jnp.dot(diff, w0b, preferred_element_type=jnp.float32))
    hb = _layernorm(hb, gb, bb)
    lb = jnp.sum(hb * w1b, axis=-1, keepdims=True)                   # (1, 1)

    hs = _gelu(jnp.dot(diff, w0s, preferred_element_type=jnp.float32))
    hs = _layernorm(hs, gs, bs)
    ls = jnp.sum(hs * w1s, axis=-1, keepdims=True)                   # (1, 1)

    # ---- losses ----
    aid = idx_ref[0]
    m = jnp.max(pred_col, axis=0, keepdims=True)
    lse = m + jnp.log(jnp.sum(jnp.exp(pred_col - m), axis=0, keepdims=True))
    tgt = jnp.sum(jnp.where(rows_n1 == aid, pred_col, 0.0), axis=0, keepdims=True)
    ce = lse - tgt                                                   # (1, 1)

    ans = ans_ref[0]
    loss_b = 0.2 * _bce_with_logits(lb, ans)
    loss_s = 0.2 * _bce_with_logits(ls, ans)

    # ---- direct static-row stores (no iota/select over the output slab) ----
    out_ref[_ROW_BOTH:_ROW_BOTH + 1, :] = jnp.broadcast_to(lb, (1, LANES))
    out_ref[_ROW_SEL:_ROW_SEL + 1, :] = jnp.broadcast_to(ls, (1, LANES))
    out_ref[_ROW_LOSS_QT0:_ROW_LOSS_QT0 + 1, :] = jnp.broadcast_to(ce, (1, LANES))
    out_ref[_ROW_LOSS_QT1:_ROW_LOSS_QT1 + 1, :] = jnp.broadcast_to(loss_b, (1, LANES))
    out_ref[_ROW_LOSS_QT2:_ROW_LOSS_QT2 + 1, :] = jnp.broadcast_to(loss_s, (1, LANES))
    out_ref[_ROW_LOSS_QT2 + 1:16, :] = jnp.zeros((16 - _ROW_LOSS_QT2 - 1, LANES),
                                                 jnp.float32)


# --------------------------------- wrappers ----------------------------------
_VMEM = pl.BlockSpec(memory_space=pltpu.MemorySpace.VMEM)
_SMEM = pl.BlockSpec(memory_space=pltpu.MemorySpace.SMEM)


def _fused_call(idx, ans, a_t, x, wmats, vecs):
    return pl.pallas_call(
        cognitive_graph_kernel,
        out_shape=jax.ShapeDtypeStruct((16, LANES), jnp.float32),
        in_specs=[_SMEM, _SMEM, _VMEM, _VMEM, _VMEM, _VMEM],
        out_specs=_VMEM,
        cost_estimate=pl.CostEstimate(flops=60_000, transcendentals=2_000,
                                      bytes_accessed=32_000),
    )(idx, ans, a_t, x, wmats, vecs)


@jax.jit
def cognitive_graph_forward(A, semantics, wmats, vecs, idx, ans):
    """Single-dispatch forward: one fused pallas_call; only slicing afterwards."""
    out = _fused_call(idx, ans, A.T, semantics, wmats, vecs)
    pred = out[:N, 0]                         # GCN(...).squeeze(-1)
    logit_both = out[_ROW_BOTH, 0]            # both_net(diff).squeeze(-1)
    logit_sel = out[_ROW_SEL, 0]              # select_net(diff).squeeze(-1)
    final_loss_qt0 = out[_ROW_LOSS_QT0, 0]    # CrossEntropy (question_type == 0)
    final_loss_qt1 = out[_ROW_LOSS_QT1, 0]    # 0.2 * BCE both (question_type == 1)
    final_loss_qt2 = out[_ROW_LOSS_QT2, 0]    # 0.2 * BCE select (question_type == 2)
    return pred, logit_both, logit_sel, final_loss_qt0, final_loss_qt1, final_loss_qt2


# ---------------------------------- params ------------------------------------
def init_params(key):
    ks = jax.random.split(key, 8)
    std = 0.05  # GCN.init_weights: normal(mean=0, std=0.05) for Linear weights
    gcn = dict(
        wd=std * jax.random.normal(ks[0], (H, H), jnp.float32),    # diffusion.weight (out,in)
        wr=std * jax.random.normal(ks[1], (H, H), jnp.float32),    # retained.weight
        wp0=std * jax.random.normal(ks[2], (H, H), jnp.float32),   # predict.layers[0].weight
        wp1=std * jax.random.normal(ks[3], (H,), jnp.float32),     # predict.layers[1].weight (1,H) row
        gamma=jnp.ones((H,), jnp.float32),
        beta=jnp.zeros((H,), jnp.float32),
    )
    both = dict(
        w0=std * jax.random.normal(ks[4], (H, H), jnp.float32),
        w1=std * jax.random.normal(ks[5], (H,), jnp.float32),
        gamma=jnp.ones((H,), jnp.float32),
        beta=jnp.zeros((H,), jnp.float32),
    )
    select = dict(
        w0=std * jax.random.normal(ks[6], (H, H), jnp.float32),
        w1=std * jax.random.normal(ks[7], (H,), jnp.float32),
        gamma=jnp.ones((H,), jnp.float32),
        beta=jnp.zeros((H,), jnp.float32),
    )
    return gcn, both, select


def prepare_kernel_params(gcn, both, select):
    """One-time layout prep outside the kernel.

    All (out,in) torch-layout Linear weights are transposed to (in,out) and
    stacked into a single (5,H,H) slab; the LayerNorm params and final
    Linear(H,1) weight rows are packed into one (16,H) slab.  The kernel picks
    them out with static slices (zero runtime cost).
    NOTE: all Linear layers are bias-free, matching MLP/GCN(bias=False) in the
    reference module.
    """
    wmats = jnp.stack([gcn["wd"].T, gcn["wr"].T, gcn["wp0"].T,
                       both["w0"].T, select["w0"].T], axis=0)          # (5, H, H)
    rows = jnp.stack([gcn["gamma"], gcn["beta"], gcn["wp1"],
                      both["gamma"], both["beta"], both["w1"],
                      select["gamma"], select["beta"], select["w1"]], axis=0)  # (9, H)
    vecs = jnp.concatenate([rows, jnp.zeros((16 - rows.shape[0], H), jnp.float32)],
                           axis=0)                                     # (16, H)
    return wmats, vecs


# ----------------------------------- main --------------------------------------
if __name__ == "__main__":
    key = jax.random.PRNGKey(0)
    k_a, k_s, k_p = jax.random.split(key, 3)

    # TODO(synk): the external BERT `model(*batch)` that produces `semantics`,
    # `hop_loss`, `ans_loss` (and the bundle/tokenization bookkeeping) has no
    # Pallas equivalent here; we synthesize `semantics` and use zero placeholders.
    hop_loss = jnp.float32(0.0)
    ans_loss = jnp.float32(0.0)

    A = jax.random.uniform(k_a, (N, N), jnp.float32)            # bundle.adj
    semantics = jax.random.normal(k_s, (N, H), jnp.float32)     # node embeddings
    gcn_p, both_p, select_p = init_params(k_p)
    wmats, vecs = prepare_kernel_params(gcn_p, both_p, select_p)

    # question_type == 0 uses answer_id; question_type 1/2 use (x, y, ans).
    answer_id, x_idx, y_idx, ans = 3, 1, 5, 1.0
    idx = jnp.array([answer_id, x_idx, y_idx], jnp.int32)       # SMEM scalars
    ans_arr = jnp.array([ans], jnp.float32)

    # TODO(synk): to process many graphs/questions at once, add a leading
    # "parallel" grid axis over graphs so both v7x TensorCores are used.
    (pred, logit_both, logit_sel,
     final_loss_qt0, final_loss_qt1, final_loss_qt2) = cognitive_graph_forward(
        A, semantics, wmats, vecs, idx, ans_arr)

    outs = (hop_loss, ans_loss, final_loss_qt0, final_loss_qt1, final_loss_qt2,
            pred, logit_both, logit_sel)
    jax.block_until_ready(outs)
    print("KERNEL_OK")
</pallas_src>

<mosaic_0001>
module attributes {stable_mosaic.version = 11 : i64} {
  func.func @cognitive_graph_kernel(%arg0: memref<3xi32, #tpu.memory_space<smem>>, %arg1: memref<1xf32, #tpu.memory_space<smem>>, %arg2: memref<8x8xf32, #tpu.memory_space<vmem>>, %arg3: memref<8x32xf32, #tpu.memory_space<vmem>>, %arg4: memref<5x32x32xf32, #tpu.memory_space<vmem>>, %arg5: memref<16x32xf32, #tpu.memory_space<vmem>>, %arg6: memref<16x128xf32, #tpu.memory_space<vmem>>) attributes {dimension_semantics = [], scalar_prefetch = 0 : i64, scratch_operands = 0 : i64, tpu.core_type = #tpu.core_type<tc>} {
    %c0 = arith.constant 0 : index
    %c0_0 = arith.constant 0 : index
    %0 = vector.load %arg2[%c0, %c0_0] : memref<8x8xf32, #tpu.memory_space<vmem>>, vector<8x8xf32>
    %c0_1 = arith.constant 0 : index
    %c0_2 = arith.constant 0 : index
    %1 = vector.load %arg3[%c0_1, %c0_2] : memref<8x32xf32, #tpu.memory_space<vmem>>, vector<8x32xf32>
    %c0_3 = arith.constant 0 : index
    %c0_4 = arith.constant 0 : index
    %c0_5 = arith.constant 0 : index
    %2 = vector.load %arg4[%c0_3, %c0_4, %c0_5] : memref<5x32x32xf32, #tpu.memory_space<vmem>>, vector<1x32x32xf32>
    %3 = vector.shape_cast %2 : vector<1x32x32xf32> to vector<32x32xf32>
    %c1 = arith.constant 1 : index
    %c0_6 = arith.constant 0 : index
    %c0_7 = arith.constant 0 : index
    %4 = vector.load %arg4[%c1, %c0_6, %c0_7] : memref<5x32x32xf32, #tpu.memory_space<vmem>>, vector<1x32x32xf32>
    %5 = vector.shape_cast %4 : vector<1x32x32xf32> to vector<32x32xf32>
    %c2 = arith.constant 2 : index
    %c0_8 = arith.constant 0 : index
    %c0_9 = arith.constant 0 : index
    %6 = vector.load %arg4[%c2, %c0_8, %c0_9] : memref<5x32x32xf32, #tpu.memory_space<vmem>>, vector<1x32x32xf32>
    %7 = vector.shape_cast %6 : vector<1x32x32xf32> to vector<32x32xf32>
    %c3 = arith.constant 3 : index
    %c0_10 = arith.constant 0 : index
    %c0_11 = arith.constant 0 : index
    %8 = vector.load %arg4[%c3, %c0_10, %c0_11] : memref<5x32x32xf32, #tpu.memory_space<vmem>>, vector<1x32x32xf32>
    %9 = vector.shape_cast %8 : vector<1x32x32xf32> to vector<32x32xf32>
    %c4 = arith.constant 4 : index
    %c0_12 = arith.constant 0 : index
    %c0_13 = arith.constant 0 : index
    %10 = vector.load %arg4[%c4, %c0_12, %c0_13] : memref<5x32x32xf32, #tpu.memory_space<vmem>>, vector<1x32x32xf32>
    %11 = vector.shape_cast %10 : vector<1x32x32xf32> to vector<32x32xf32>
    %c0_14 = arith.constant 0 : index
    %c0_15 = arith.constant 0 : index
    %12 = vector.load %arg5[%c0_14, %c0_15] : memref<16x32xf32, #tpu.memory_space<vmem>>, vector<1x32xf32>
    %c1_16 = arith.constant 1 : index
    %c0_17 = arith.constant 0 : index
    %13 = vector.load %arg5[%c1_16, %c0_17] : memref<16x32xf32, #tpu.memory_space<vmem>>, vector<1x32xf32>
    %c2_18 = arith.constant 2 : index
    %c0_19 = arith.constant 0 : index
    %14 = vector.load %arg5[%c2_18, %c0_19] : memref<16x32xf32, #tpu.memory_space<vmem>>, vector<1x32xf32>
    %c3_20 = arith.constant 3 : index
    %c0_21 = arith.constant 0 : index
    %15 = vector.load %arg5[%c3_20, %c0_21] : memref<16x32xf32, #tpu.memory_space<vmem>>, vector<1x32xf32>
    %c4_22 = arith.constant 4 : index
    %c0_23 = arith.constant 0 : index
    %16 = vector.load %arg5[%c4_22, %c0_23] : memref<16x32xf32, #tpu.memory_space<vmem>>, vector<1x32xf32>
    %c5 = arith.constant 5 : index
    %c0_24 = arith.constant 0 : index
    %17 = vector.load %arg5[%c5, %c0_24] : memref<16x32xf32, #tpu.memory_space<vmem>>, vector<1x32xf32>
    %c6 = arith.constant 6 : index
    %c0_25 = arith.constant 0 : index
    %18 = vector.load %arg5[%c6, %c0_25] : memref<16x32xf32, #tpu.memory_space<vmem>>, vector<1x32xf32>
    %c7 = arith.constant 7 : index
    %c0_26 = arith.constant 0 : index
    %19 = vector.load %arg5[%c7, %c0_26] : memref<16x32xf32, #tpu.memory_space<vmem>>, vector<1x32xf32>
    %c8 = arith.constant 8 : index
    %c0_27 = arith.constant 0 : index
    %20 = vector.load %arg5[%c8, %c0_27] : memref<16x32xf32, #tpu.memory_space<vmem>>, vector<1x32xf32>
    %cst = arith.constant dense<0.000000e+00> : vector<8x32xf32>
    %21 = tpu.matmul %1, %3, %cst {dimension_numbers = #tpu.dot_dimension_numbers<[1], [0], [0], [1], [0, 0, 1, 1], [], []>} : vector<8x32xf32>, vector<32x32xf32>, vector<8x32xf32> -> vector<8x32xf32>
    %cst_28 = arith.constant 5.000000e-01 : f32
    %22 = vector.broadcast %cst_28 : f32 to vector<8x32xf32>
    %23 = arith.mulf %21, %22 : vector<8x32xf32>
    %cst_29 = arith.constant 0.707106769 : f32
    %24 = vector.broadcast %cst_29 : f32 to vector<8x32xf32>
    %25 = arith.mulf %21, %24 : vector<8x32xf32>
    %26 = math.erf %25 : vector<8x32xf32>
    %cst_30 = arith.constant 1.000000e+00 : f32
    %27 = vector.broadcast %cst_30 : f32 to vector<8x32xf32>
    %28 = arith.addf %27, %26 : vector<8x32xf32>
    %29 = arith.mulf %23, %28 : vector<8x32xf32>
    %cst_31 = arith.constant dense<0.000000e+00> : vector<8x32xf32>
    %30 = tpu.matmul %0, %29, %cst_31 {dimension_numbers = #tpu.dot_dimension_numbers<[1], [0], [0], [1], [0, 0, 1, 1], [], []>} : vector<8x8xf32>, vector<8x32xf32>, vector<8x32xf32> -> vector<8x32xf32>
    %cst_32 = arith.constant dense<0.000000e+00> : vector<8x32xf32>
    %31 = tpu.matmul %1, %5, %cst_32 {dimension_numbers = #tpu.dot_dimension_numbers<[1], [0], [0], [1], [0, 0, 1, 1], [], []>} : vector<8x32xf32>, vector<32x32xf32>, vector<8x32xf32> -> vector<8x32xf32>
    %32 = arith.addf %31, %30 : vector<8x32xf32>
    %cst_33 = arith.constant 5.000000e-01 : f32
    %33 = vector.broadcast %cst_33 : f32 to vector<8x32xf32>
    %34 = arith.mulf %32, %33 : vector<8x32xf32>
    %cst_34 = arith.constant 0.707106769 : f32
    %35 = vector.broadcast %cst_34 : f32 to vector<8x32xf32>
    %36 = arith.mulf %32, %35 : vector<8x32xf32>
    %37 = math.erf %36 : vector<8x32xf32>
    %cst_35 = arith.constant 1.000000e+00 : f32
    %38 = vector.broadcast %cst_35 : f32 to vector<8x32xf32>
    %39 = arith.addf %38, %37 : vector<8x32xf32>
    %40 = arith.mulf %34, %39 : vector<8x32xf32>
    %cst_36 = arith.constant dense<0.000000e+00> : vector<8x32xf32>
    %41 = tpu.matmul %40, %3, %cst_36 {dimension_numbers = #tpu.dot_dimension_numbers<[1], [0], [0], [1], [0, 0, 1, 1], [], []>} : vector<8x32xf32>, vector<32x32xf32>, vector<8x32xf32> -> vector<8x32xf32>
    %cst_37 = arith.constant 5.000000e-01 : f32
    %42 = vector.broadcast %cst_37 : f32 to vector<8x32xf32>
    %43 = arith.mulf %41, %42 : vector<8x32xf32>
    %cst_38 = arith.constant 0.707106769 : f32
    %44 = vector.broadcast %cst_38 : f32 to vector<8x32xf32>
    %45 = arith.mulf %41, %44 : vector<8x32xf32>
    %46 = math.erf %45 : vector<8x32xf32>
    %cst_39 = arith.constant 1.000000e+00 : f32
    %47 = vector.broadcast %cst_39 : f32 to vector<8x32xf32>
    %48 = arith.addf %47, %46 : vector<8x32xf32>
    %49 = arith.mulf %43, %48 : vector<8x32xf32>
    %cst_40 = arith.constant dense<0.000000e+00> : vector<8x32xf32>
    %50 = tpu.matmul %0, %49, %cst_40 {dimension_numbers = #tpu.dot_dimension_numbers<[1], [0], [0], [1], [0, 0, 1, 1], [], []>} : vector<8x8xf32>, vector<8x32xf32>, vector<8x32xf32> -> vector<8x32xf32>
    %cst_41 = arith.constant dense<0.000000e+00> : vector<8x32xf32>
    %51 = tpu.matmul %40, %5, %cst_41 {dimension_numbers = #tpu.dot_dimension_numbers<[1], [0], [0], [1], [0, 0, 1, 1], [], []>} : vector<8x32xf32>, vector<32x32xf32>, vector<8x32xf32> -> vector<8x32xf32>
    %52 = arith.addf %51, %50 : vector<8x32xf32>
    %cst_42 = arith.constant 5.000000e-01 : f32
    %53 = vector.broadcast %cst_42 : f32 to vector<8x32xf32>
    %54 = arith.mulf %52, %53 : vector<8x32xf32>
    %cst_43 = arith.constant 0.707106769 : f32
    %55 = vector.broadcast %cst_43 : f32 to vector<8x32xf32>
    %56 = arith.mulf %52, %55 : vector<8x32xf32>
    %57 = math.erf %56 : vector<8x32xf32>
    %cst_44 = arith.constant 1.000000e+00 : f32
    %58 = vector.broadcast %cst_44 : f32 to vector<8x32xf32>
    %59 = arith.addf %58, %57 : vector<8x32xf32>
    %60 = arith.mulf %54, %59 : vector<8x32xf32>
    %cst_45 = arith.constant dense<0.000000e+00> : vector<8x32xf32>
    %61 = tpu.matmul %60, %7, %cst_45 {dimension_numbers = #tpu.dot_dimension_numbers<[1], [0], [0], [1], [0, 0, 1, 1], [], []>} : vector<8x32xf32>, vector<32x32xf32>, vector<8x32xf32> -> vector<8x32xf32>
    %cst_46 = arith.constant 5.000000e-01 : f32
    %62 = vector.broadcast %cst_46 : f32 to vector<8x32xf32>
    %63 = arith.mulf %61, %62 : vector<8x32xf32>
    %cst_47 = arith.constant 0.707106769 : f32
    %64 = vector.broadcast %cst_47 : f32 to vector<8x32xf32>
    %65 = arith.mulf %61, %64 : vector<8x32xf32>
    %66 = math.erf %65 : vector<8x32xf32>
    %cst_48 = arith.constant 1.000000e+00 : f32
    %67 = vector.broadcast %cst_48 : f32 to vector<8x32xf32>
    %68 = arith.addf %67, %66 : vector<8x32xf32>
    %69 = arith.mulf %63, %68 : vector<8x32xf32>
    %cst_49 = arith.constant dense<0.000000e+00> : vector<8xf32>
    %70 = vector.multi_reduction <add>, %69, %cst_49 [1] : vector<8x32xf32> to vector<8xf32>
    %71 = vector.shape_cast %70 : vector<8xf32> to vector<8x1xf32>
    %cst_50 = arith.constant 3.200000e+01 : f32
    %72 = vector.broadcast %cst_50 : f32 to vector<8x1xf32>
    %73 = arith.divf %71, %72 : vector<8x1xf32>
    %74 = vector.broadcast %73 : vector<8x1xf32> to vector<8x32xf32>
    %75 = arith.subf %69, %74 : vector<8x32xf32>
    %76 = arith.mulf %75, %75 : vector<8x32xf32>
    %cst_51 = arith.constant dense<0.000000e+00> : vector<8xf32>
    %77 = vector.multi_reduction <add>, %76, %cst_51 [1] : vector<8x32xf32> to vector<8xf32>
    %78 = vector.shape_cast %77 : vector<8xf32> to vector<8x1xf32>
    %cst_52 = arith.constant 3.200000e+01 : f32
    %79 = vector.broadcast %cst_52 : f32 to vector<8x1xf32>
    %80 = arith.divf %78, %79 : vector<8x1xf32>
    %81 = vector.broadcast %73 : vector<8x1xf32> to vector<8x32xf32>
    %82 = arith.subf %69, %81 : vector<8x32xf32>
    %cst_53 = arith.constant 9.99999974E-6 : f32
    %83 = vector.broadcast %cst_53 : f32 to vector<8x1xf32>
    %84 = arith.addf %80, %83 : vector<8x1xf32>
    %85 = math.rsqrt %84 : vector<8x1xf32>
    %86 = vector.broadcast %85 : vector<8x1xf32> to vector<8x32xf32>
    %87 = arith.mulf %82, %86 : vector<8x32xf32>
    %88 = vector.broadcast %12 : vector<1x32xf32> to vector<8x32xf32>
    %89 = arith.mulf %87, %88 : vector<8x32xf32>
    %90 = vector.broadcast %13 : vector<1x32xf32> to vector<8x32xf32>
    %91 = arith.addf %89, %90 : vector<8x32xf32>
    %92 = vector.broadcast %14 : vector<1x32xf32> to vector<8x32xf32>
    %93 = arith.mulf %91, %92 : vector<8x32xf32>
    %cst_54 = arith.constant dense<0.000000e+00> : vector<8xf32>
    %94 = vector.multi_reduction <add>, %93, %cst_54 [1] : vector<8x32xf32> to vector<8xf32>
    %95 = vector.shape_cast %94 : vector<8xf32> to vector<8x1xf32>
    %96 = vector.shape_cast %95 : vector<8x1xf32> to vector<8x1xf32>
    %97 = vector.broadcast %96 : vector<8x1xf32> to vector<8x128xf32>
    %c0_55 = arith.constant 0 : index
    %c0_56 = arith.constant 0 : index
    %98 = vector.load %arg6[%c0_55, %c0_56] : memref<16x128xf32, #tpu.memory_space<vmem>>, vector<8x128xf32>
    tpu.vector_store %arg6[%c0_55, %c0_56], %97 {strides = array<i32>} : memref<16x128xf32, #tpu.memory_space<vmem>>, vector<8x128xf32>,
    %c1_57 = arith.constant 1 : index
    %99 = memref.load %arg0[%c1_57] : memref<3xi32, #tpu.memory_space<smem>>
    %c2_58 = arith.constant 2 : index
    %100 = memref.load %arg0[%c2_58] : memref<3xi32, #tpu.memory_space<smem>>
    %101 = tpu.iota {dimensions = array<i32: 0>} : vector<8x1xi32>
    %102 = vector.broadcast %99 : i32 to vector<8x1xi32>
    %103 = arith.cmpi eq, %101, %102 : vector<8x1xi32>
    %cst_59 = arith.constant 0.000000e+00 : f32
    %104 = vector.shape_cast %103 : vector<8x1xi1> to vector<8x1xi1>
    %105 = vector.broadcast %104 : vector<8x1xi1> to vector<8x32xi1>
    %106 = vector.broadcast %cst_59 : f32 to vector<8x32xf32>
    %107 = arith.select %105, %1, %106 : vector<8x32xi1>, vector<8x32xf32>
    %cst_60 = arith.constant dense<0.000000e+00> : vector<32xf32>
    %108 = vector.multi_reduction <add>, %107, %cst_60 [0] : vector<8x32xf32> to vector<32xf32>
    %109 = vector.shape_cast %108 : vector<32xf32> to vector<1x32xf32>
    %110 = vector.broadcast %100 : i32 to vector<8x1xi32>
    %111 = arith.cmpi eq, %101, %110 : vector<8x1xi32>
    %cst_61 = arith.constant 0.000000e+00 : f32
    %112 = vector.shape_cast %111 : vector<8x1xi1> to vector<8x1xi1>
    %113 = vector.broadcast %112 : vector<8x1xi1> to vector<8x32xi1>
    %114 = vector.broadcast %cst_61 : f32 to vector<8x32xf32>
    %115 = arith.select %113, %1, %114 : vector<8x32xi1>, vector<8x32xf32>
    %cst_62 = arith.constant dense<0.000000e+00> : vector<32xf32>
    %116 = vector.multi_reduction <add>, %115, %cst_62 [0] : vector<8x32xf32> to vector<32xf32>
    %117 = vector.shape_cast %116 : vector<32xf32> to vector<1x32xf32>
    %118 = arith.subf %109, %117 : vector<1x32xf32>
    %cst_63 = arith.constant dense<0.000000e+00> : vector<1x32xf32>
    %119 = tpu.matmul %118, %9, %cst_63 {dimension_numbers = #tpu.dot_dimension_numbers<[1], [0], [0], [1], [0, 0, 1, 1], [], []>} : vector<1x32xf32>, vector<32x32xf32>, vector<1x32xf32> -> vector<1x32xf32>
    %cst_64 = arith.constant 5.000000e-01 : f32
    %120 = vector.broadcast %cst_64 : f32 to vector<1x32xf32>
    %121 = arith.mulf %119, %120 : vector<1x32xf32>
    %cst_65 = arith.constant 0.707106769 : f32
    %122 = vector.broadcast %cst_65 : f32 to vector<1x32xf32>
    %123 = arith.mulf %119, %122 : vector<1x32xf32>
    %124 = math.erf %123 : vector<1x32xf32>
    %cst_66 = arith.constant 1.000000e+00 : f32
    %125 = vector.broadcast %cst_66 : f32 to vector<1x32xf32>
    %126 = arith.addf %125, %124 : vector<1x32xf32>
    %127 = arith.mulf %121, %126 : vector<1x32xf32>
    %cst_67 = arith.constant dense<0.000000e+00> : vector<1xf32>
    %128 = vector.multi_reduction <add>, %127, %cst_67 [1] : vector<1x32xf32> to vector<1xf32>
    %129 = vector.shape_cast %128 : vector<1xf32> to vector<1x1xf32>
    %cst_68 = arith.constant 3.200000e+01 : f32
    %130 = vector.broadcast %cst_68 : f32 to vector<1x1xf32>
    %131 = arith.divf %129, %130 : vector<1x1xf32>
    %132 = vector.broadcast %131 : vector<1x1xf32> to vector<1x32xf32>
    %133 = arith.subf %127, %132 : vector<1x32xf32>
    %134 = arith.mulf %133, %133 : vector<1x32xf32>
    %cst_69 = arith.constant dense<0.000000e+00> : vector<1xf32>
    %135 = vector.multi_reduction <add>, %134, %cst_69 [1] : vector<1x32xf32> to vector<1xf32>
    %136 = vector.shape_cast %135 : vector<1xf32> to vector<1x1xf32>
    %cst_70 = arith.constant 3.200000e+01 : f32
    %137 = vector.broadcast %cst_70 : f32 to vector<1x1xf32>
    %138 = arith.divf %136, %137 : vector<1x1xf32>
    %139 = vector.broadcast %131 : vector<1x1xf32> to vector<1x32xf32>
    %140 = arith.subf %127, %139 : vector<1x32xf32>
    %cst_71 = arith.constant 9.99999974E-6 : f32
    %141 = vector.broadcast %cst_71 : f32 to vector<1x1xf32>
    %142 = arith.addf %138, %141 : vector<1x1xf32>
    %143 = math.rsqrt %142 : vector<1x1xf32>
    %144 = vector.broadcast %143 : vector<1x1xf32> to vector<1x32xf32>
    %145 = arith.mulf %140, %144 : vector<1x32xf32>
    %146 = arith.mulf %145, %15 : vector<1x32xf32>
    %147 = arith.addf %146, %16 : vector<1x32xf32>
    %148 = arith.mulf %147, %17 : vector<1x32xf32>
    %cst_72 = arith.constant dense<0.000000e+00> : vector<1xf32>
    %149 = vector.multi_reduction <add>, %148, %cst_72 [1] : vector<1x32xf32> to vector<1xf32>
    %150 = vector.shape_cast %149 : vector<1xf32> to vector<1x1xf32>
    %cst_73 = arith.constant dense<0.000000e+00> : vector<1x32xf32>
    %151 = tpu.matmul %118, %11, %cst_73 {dimension_numbers = #tpu.dot_dimension_numbers<[1], [0], [0], [1], [0, 0, 1, 1], [], []>} : vector<1x32xf32>, vector<32x32xf32>, vector<1x32xf32> -> vector<1x32xf32>
    %cst_74 = arith.constant 5.000000e-01 : f32
    %152 = vector.broadcast %cst_74 : f32 to vector<1x32xf32>
    %153 = arith.mulf %151, %152 : vector<1x32xf32>
    %cst_75 = arith.constant 0.707106769 : f32
    %154 = vector.broadcast %cst_75 : f32 to vector<1x32xf32>
    %155 = arith.mulf %151, %154 : vector<1x32xf32>
    %156 = math.erf %155 : vector<1x32xf32>
    %cst_76 = arith.constant 1.000000e+00 : f32
    %157 = vector.broadcast %cst_76 : f32 to vector<1x32xf32>
    %158 = arith.addf %157, %156 : vector<1x32xf32>
    %159 = arith.mulf %153, %158 : vector<1x32xf32>
    %cst_77 = arith.constant dense<0.000000e+00> : vector<1xf32>
    %160 = vector.multi_reduction <add>, %159, %cst_77 [1] : vector<1x32xf32> to vector<1xf32>
    %161 = vector.shape_cast %160 : vector<1xf32> to vector<1x1xf32>
    %cst_78 = arith.constant 3.200000e+01 : f32
    %162 = vector.broadcast %cst_78 : f32 to vector<1x1xf32>
    %163 = arith.divf %161, %162 : vector<1x1xf32>
    %164 = vector.broadcast %163 : vector<1x1xf32> to vector<1x32xf32>
    %165 = arith.subf %159, %164 : vector<1x32xf32>
    %166 = arith.mulf %165, %165 : vector<1x32xf32>
    %cst_79 = arith.constant dense<0.000000e+00> : vector<1xf32>
    %167 = vector.multi_reduction <add>, %166, %cst_79 [1] : vector<1x32xf32> to vector<1xf32>
    %168 = vector.shape_cast %167 : vector<1xf32> to vector<1x1xf32>
    %cst_80 = arith.constant 3.200000e+01 : f32
    %169 = vector.broadcast %cst_80 : f32 to vector<1x1xf32>
    %170 = arith.divf %168, %169 : vector<1x1xf32>
    %171 = vector.broadcast %163 : vector<1x1xf32> to vector<1x32xf32>
    %172 = arith.subf %159, %171 : vector<1x32xf32>
    %cst_81 = arith.constant 9.99999974E-6 : f32
    %173 = vector.broadcast %cst_81 : f32 to vector<1x1xf32>
    %174 = arith.addf %170, %173 : vector<1x1xf32>
    %175 = math.rsqrt %174 : vector<1x1xf32>
    %176 = vector.broadcast %175 : vector<1x1xf32> to vector<1x32xf32>
    %177 = arith.mulf %172, %176 : vector<1x32xf32>
    %178 = arith.mulf %177, %18 : vector<1x32xf32>
    %179 = arith.addf %178, %19 : vector<1x32xf32>
    %180 = arith.mulf %179, %20 : vector<1x32xf32>
    %cst_82 = arith.constant dense<0.000000e+00> : vector<1xf32>
    %181 = vector.multi_reduction <add>, %180, %cst_82 [1] : vector<1x32xf32> to vector<1xf32>
    %182 = vector.shape_cast %181 : vector<1xf32> to vector<1x1xf32>
    %c0_83 = arith.constant 0 : index
    %183 = memref.load %arg0[%c0_83] : memref<3xi32, #tpu.memory_space<smem>>
    %cst_84 = arith.constant dense<0xFF800000> : vector<1xf32>
    %184 = vector.multi_reduction <maximumf>, %95, %cst_84 [0] : vector<8x1xf32> to vector<1xf32>
    %185 = vector.shape_cast %184 : vector<1xf32> to vector<1x1xf32>
    %186 = vector.broadcast %185 : vector<1x1xf32> to vector<8x1xf32>
    %187 = arith.subf %95, %186 : vector<8x1xf32>
    %188 = math.exp %187 : vector<8x1xf32>
    %cst_85 = arith.constant dense<0.000000e+00> : vector<1xf32>
    %189 = vector.multi_reduction <add>, %188, %cst_85 [0] : vector<8x1xf32> to vector<1xf32>
    %190 = vector.shape_cast %189 : vector<1xf32> to vector<1x1xf32>
    %191 = math.log %190 : vector<1x1xf32>
    %192 = arith.addf %185, %191 : vector<1x1xf32>
    %193 = vector.broadcast %183 : i32 to vector<8x1xi32>
    %194 = arith.cmpi eq, %101, %193 : vector<8x1xi32>
    %cst_86 = arith.constant 0.000000e+00 : f32
    %195 = vector.broadcast %cst_86 : f32 to vector<8x1xf32>
    %196 = arith.select %194, %95, %195 : vector<8x1xi1>, vector<8x1xf32>
    %cst_87 = arith.constant dense<0.000000e+00> : vector<1xf32>
    %197 = vector.multi_reduction <add>, %196, %cst_87 [0] : vector<8x1xf32> to vector<1xf32>
    %198 = vector.shape_cast %197 : vector<1xf32> to vector<1x1xf32>
    %199 = arith.subf %192, %198 : vector<1x1xf32>
    %c0_88 = arith.constant 0 : index
    %200 = memref.load %arg1[%c0_88] : memref<1xf32, #tpu.memory_space<smem>>
    %cst_89 = arith.constant 0.000000e+00 : f32
    %201 = vector.broadcast %cst_89 : f32 to vector<1x1xf32>
    %202 = arith.maximumf %150, %201 : vector<1x1xf32>
    %203 = vector.broadcast %200 : f32 to vector<1x1xf32>
    %204 = arith.mulf %150, %203 : vector<1x1xf32>
    %205 = arith.subf %202, %204 : vector<1x1xf32>
    %206 = math.absf %150 : vector<1x1xf32>
    %cst_90 = arith.constant 0.000000e+00 : f32
    %207 = vector.broadcast %cst_90 : f32 to vector<1x1xf32>
    %208 = arith.subf %207, %206 : vector<1x1xf32>
    %209 = math.exp %208 : vector<1x1xf32>
    %cst_91 = arith.constant 1.000000e+00 : f32
    %210 = vector.broadcast %cst_91 : f32 to vector<1x1xf32>
    %211 = arith.addf %210, %209 : vector<1x1xf32>
    %212 = math.log %211 : vector<1x1xf32>
    %213 = arith.addf %205, %212 : vector<1x1xf32>
    %cst_92 = arith.constant 2.000000e-01 : f32
    %214 = vector.broadcast %cst_92 : f32 to vector<1x1xf32>
    %215 = arith.mulf %214, %213 : vector<1x1xf32>
    %cst_93 = arith.constant 0.000000e+00 : f32
    %216 = vector.broadcast %cst_93 : f32 to vector<1x1xf32>
    %217 = arith.maximumf %182, %216 : vector<1x1xf32>
    %218 = vector.broadcast %200 : f32 to vector<1x1xf32>
    %219 = arith.mulf %182, %218 : vector<1x1xf32>
    %220 = arith.subf %217, %219 : vector<1x1xf32>
    %221 = math.absf %182 : vector<1x1xf32>
    %cst_94 = arith.constant 0.000000e+00 : f32
    %222 = vector.broadcast %cst_94 : f32 to vector<1x1xf32>
    %223 = arith.subf %222, %221 : vector<1x1xf32>
    %224 = math.exp %223 : vector<1x1xf32>
    %cst_95 = arith.constant 1.000000e+00 : f32
    %225 = vector.broadcast %cst_95 : f32 to vector<1x1xf32>
    %226 = arith.addf %225, %224 : vector<1x1xf32>
    %227 = math.log %226 : vector<1x1xf32>
    %228 = arith.addf %220, %227 : vector<1x1xf32>
    %cst_96 = arith.constant 2.000000e-01 : f32
    %229 = vector.broadcast %cst_96 : f32 to vector<1x1xf32>
    %230 = arith.mulf %229, %228 : vector<1x1xf32>
    %231 = vector.shape_cast %150 : vector<1x1xf32> to vector<1x1xf32>
    %232 = vector.broadcast %231 : vector<1x1xf32> to vector<1x128xf32>
    %c8_97 = arith.constant 8 : index
    %c0_98 = arith.constant 0 : index
    %233 = vector.load %arg6[%c8_97, %c0_98] : memref<16x128xf32, #tpu.memory_space<vmem>>, vector<1x128xf32>
    tpu.vector_store %arg6[%c8_97, %c0_98], %232 {strides = array<i32>} : memref<16x128xf32, #tpu.memory_space<vmem>>, vector<1x128xf32>,
    %234 = vector.shape_cast %182 : vector<1x1xf32> to vector<1x1xf32>
    %235 = vector.broadcast %234 : vector<1x1xf32> to vector<1x128xf32>
    %c9 = arith.constant 9 : index
    %c0_99 = arith.constant 0 : index
    %236 = vector.load %arg6[%c9, %c0_99] : memref<16x128xf32, #tpu.memory_space<vmem>>, vector<1x128xf32>
    tpu.vector_store %arg6[%c9, %c0_99], %235 {strides = array<i32>} : memref<16x128xf32, #tpu.memory_space<vmem>>, vector<1x128xf32>,
    %237 = vector.shape_cast %199 : vector<1x1xf32> to vector<1x1xf32>
    %238 = vector.broadcast %237 : vector<1x1xf32> to vector<1x128xf32>
    %c10 = arith.constant 10 : index
    %c0_100 = arith.constant 0 : index
    %239 = vector.load %arg6[%c10, %c0_100] : memref<16x128xf32, #tpu.memory_space<vmem>>, vector<1x128xf32>
    tpu.vector_store %arg6[%c10, %c0_100], %238 {strides = array<i32>} : memref<16x128xf32, #tpu.memory_space<vmem>>, vector<1x128xf32>,
    %240 = vector.shape_cast %215 : vector<1x1xf32> to vector<1x1xf32>
    %241 = vector.broadcast %240 : vector<1x1xf32> to vector<1x128xf32>
    %c11 = arith.constant 11 : index
    %c0_101 = arith.constant 0 : index
    %242 = vector.load %arg6[%c11, %c0_101] : memref<16x128xf32, #tpu.memory_space<vmem>>, vector<1x128xf32>
    tpu.vector_store %arg6[%c11, %c0_101], %241 {strides = array<i32>} : memref<16x128xf32, #tpu.memory_space<vmem>>, vector<1x128xf32>,
    %243 = vector.shape_cast %230 : vector<1x1xf32> to vector<1x1xf32>
    %244 = vector.broadcast %243 : vector<1x1xf32> to vector<1x128xf32>
    %c12 = arith.constant 12 : index
    %c0_102 = arith.constant 0 : index
    %245 = vector.load %arg6[%c12, %c0_102] : memref<16x128xf32, #tpu.memory_space<vmem>>, vector<1x128xf32>
    tpu.vector_store %arg6[%c12, %c0_102], %244 {strides = array<i32>} : memref<16x128xf32, #tpu.memory_space<vmem>>, vector<1x128xf32>,
    %cst_103 = arith.constant 0.000000e+00 : f32
    %246 = vector.broadcast %cst_103 : f32 to vector<3x128xf32>
    %c13 = arith.constant 13 : index
    %c0_104 = arith.constant 0 : index
    %247 = vector.load %arg6[%c13, %c0_104] : memref<16x128xf32, #tpu.memory_space<vmem>>, vector<3x128xf32>
    tpu.vector_store %arg6[%c13, %c0_104], %246 {strides = array<i32>} : memref<16x128xf32, #tpu.memory_space<vmem>>, vector<3x128xf32>,
    return
  }
}

</mosaic_0001>

<bundles_post_ra>
// kernel: cognitive_graph_forward.1
= control target key start
LH: loop header
LB: loop body
LE: loop exit
PB: predicated region body
PF: predicated region fallthrough
CT: control target
= control target key end

     0   :  { %12 = vsyncpa [#allocation5], 0  ;;  %s1334_s0 = inlined_call_operand.vmem [shape: s32[3], index: 0, kind: input, shape index: {}]   ;;  %s1335_s1 = inlined_call_operand.<no memory space> [shape: f32[1], index: 1, kind: input, shape index: {}]   ;;  %s1336_s2 = inlined_call_operand.vmem [shape: f32[8,8], index: 2, kind: input, shape index: {}]   ;;  %s1337_s3 = inlined_call_operand.vmem [shape: f32[8,32], index: 3, kind: input, shape index: {}]   ;;  %s1338_s4 = inlined_call_operand.hbm [shape: f32[5,32,32], index: 4, kind: input, shape index: {}]   ;;  %s1339_s5 = inlined_call_operand.vmem [shape: f32[16,32], index: 5, kind: input, shape index: {}]   ;;  %s1340_s6 = inlined_call_operand.vmem [shape: f32[16,128], index: 6, kind: output, shape index: {}]  }
   0x1   :  { %s20_s23 = sshll.u32 %s1334_s0, 4  ;;  %s21_s23 = int_to_ptr.vmem [resolvable:$true] %s20_s23 }
   0x2   :  { %13 = vsyncpa [#allocation4], 0  ;;  %s1114_s24 = scalar_lea.vmem %s21_s23, 16  ;;  %p1119_p1 = scmp.lt.s32.totalorder %s21_s23, %s21_s23 }
   0x3   :  { %p1115_p0 = scmp.ne.s32.totalorder %s21_s23, %s1114_s24  ;;  %p1120_p2 = scmp.lt.s32.totalorder %s1114_s24, %s1114_s24 }
   0x5   :  { %p1121_p3 = por %p1120_p2, %p1119_p1 }
   0x7   :  { %p1122_p4 = pnand %p1121_p3, %p1115_p0 }
   0x9   :  { %1125 = shalt.err (!%p1122_p4)
}
   0xa   :  { %s1150_s25 = smov [#allocation3]   ;;  %s1151_s26 = smov [#allocation6]  }
   0xb   :  { %23 = dma.vmem_to_smem %s21_s23, 16, %s1150_s25, [#allocation5]  }
   0xc   :  { %s35_s27 = sshll.u32 %s1151_s26, 4  ;;  %s36_s27 = int_to_ptr.vmem [resolvable:$true] %s35_s27 }
   0xd   :  { %s1134_s28 = scalar_lea.vmem %s36_s27, 2560  ;;  %p1139_p6 = scmp.lt.s32.totalorder %s36_s27, %s36_s27 }
   0xe   :  { %p1135_p5 = scmp.ne.s32.totalorder %s36_s27, %s1134_s28  ;;  %p1140_p7 = scmp.lt.s32.totalorder %s1134_s28, %s1134_s28 }
  0x10   :  { %p1141_p8 = por %p1140_p7, %p1139_p6 }
  0x12   :  { %p1142_p9 = pnand %p1141_p8, %p1135_p5 }
  0x14   :  { %1145 = shalt.err (!%p1142_p9)
}
  0x15   :  { %s1152_s0 = smov 128   ;;  %s1153_s29 = smov 8  }
  0x16   :  { %41 = dma.hbm_to_vmem [thread:$0]  %s1338_s4, 2560, %s36_s27, [#allocation4], %s1152_s0, %s1152_s0, %s1153_s29  }
  0x17   :  { %1146 = dma.done.wait [#allocation5], 16  }
  0x18   :  { %1147 = vsyncadd [#allocation5], 4294967280 }
  0x19   :  { %1148 = dma.done.wait [#allocation4], 2560  }
  0x1a   :  { %1149 = vsyncadd [#allocation4], 4294964736 }
  0x1b   :  { %50 = sfence }
  0x1c   :  { %v56_v0 = vld [vmem:[#allocation6 + $0x18] sm:$0xff]  ;;  %v1154_v1 = vmov 0.0   ;;  %v55_v2 = vld [vmem:[#allocation6 + $0x10] sm:$0xff]  ;;  %vm1155_vm0 = vmmov 0   ;;  %v54_v3 = vld [vmem:[#allocation6 + $0x8] sm:$0xff]  ;;  %vm86_vm1 = vcmask 261120   ;;  %v650_v35 = vlaneseq }
  0x1d   :  { %989 = vmatprep.subr.mxu0 %v1154_v1  ;;  %929 = vst [vmem:[%s1340_s6 + $0xd] sm:$0x7] %v1154_v1  ;;  %997 = vmatprep.mubr.msk.f32.mxu0 %vm1155_vm0, %v1154_v1  ;;  %v53_v4 = vld [vmem:[#allocation6] sm:$0xff]  ;;  %vm165_vm2 = vcmask 64512   ;;  %v61_v14 = vld [vmem:[#allocation6 + $0x38] sm:$0xff]  ;;  %v60_v15 = vld [vmem:[#allocation6 + $0x30] sm:$0xff] }
  0x1e   :  { %990 = vmatpush3.msra.mxu0 %v56_v0  ;;  %1000 = vmatprep.subr.mxu1 %v1154_v1  ;;  %v1212_v5 = vld [vmem:[%s1337_s3] sm:$0xff]  ;;  %v59_v16 = vld [vmem:[#allocation6 + $0x28] sm:$0xff]  ;;  %s947_s12 = sld [smem:[#allocation3 + $0x2]]  ;;  %v1253_v36 = vshrl.u32 %v650_v35, 7  ;;  %v66_v51 = vld [vmem:[#allocation6 + $0x58] sm:$0xff]  ;;  %vm755_vm5 = vcmask 253952  }
  0x1f   :  { %991 = vmatprep.subr.mxu0 %v1154_v1  ;;  %1002 = vmatprep.mubr.msk.f32.mxu1 %vm1155_vm0, %v1154_v1  ;;  %v51_v13 = vld [vmem:[%s1336_s2] sm:$0xff]  ;;  %s946_s2 = sld [smem:[#allocation3 + $0x1]]  ;;  %v65_v52 = vld [vmem:[#allocation6 + $0x50] sm:$0xff]  ;;  %v64_v55 = vld [vmem:[#allocation6 + $0x48] sm:$0xff] }
  0x20   :  { %992 = vmatpush3.msra.mxu0 %v55_v2  ;;  %v58_v17 = vld [vmem:[#allocation6 + $0x20] sm:$0xff]  ;;  %v71_v56 = vld [vmem:[#allocation6 + $0x78] sm:$0xff]  ;;  %v70_v58 = vld [vmem:[#allocation6 + $0x70] sm:$0xff]  ;;  %s869_s10 = sld [smem:[#allocation3]] }
  0x21   :  { %993 = vmatprep.subr.mxu0 %v1154_v1  ;;  %v63_v57 = vld [vmem:[#allocation6 + $0x40] sm:$0xff]  ;;  %v69_v61 = vld [vmem:[#allocation6 + $0x68] sm:$0xff] }
  0x22   :  { %994 = vmatpush3.msra.mxu0 %v54_v3  ;;  %v68_v62 = vld [vmem:[#allocation6 + $0x60] sm:$0xff] }
  0x23   :  { %995 = vmatprep.subr.mxu0 %v1154_v1 }
  0x24   :  { %996 = vmatpush3.msra.mxu0 %v53_v4  ;;  %v664_v38 = vstv %s947_s12 }
  0x25   :  { %998 = vmatmul.mubr.msk.f32.vlgmr.msra.gmra.mxu0 %vm86_vm1, %v1212_v5  ;;  %1016 = vmatprep.subr.mxu0 %v1154_v1  ;;  %v652_v37 = vstv %s946_s2  ;;  %vm665_vm4 = vcmp.eq.s32.totalorder %v1253_v36, %v664_v38 }
  0x26   :  { %1017 = vmatpush3.msra.mxu0 %v56_v0  ;;  %1024 = vmatprep.mubr.msk.f32.mxu0 %vm1155_vm0, %v1154_v1  ;;  %vm653_vm3 = vcmp.eq.s32.totalorder %v1253_v36, %v652_v37  ;;  %v668_v40 = vsel %vm665_vm4, %v1212_v5, 0.0 }
  0x27   :  { %1018 = vmatprep.subr.mxu0 %v1154_v1  ;;  %v656_v39 = vsel %vm653_vm3, %v1212_v5, 0.0  ;;  %v669_v42 = vsel %vm86_vm1, %v668_v40, 0.0 }
  0x28   :  { %1019 = vmatpush3.msra.mxu0 %v55_v2  ;;  %v657_v41 = vsel %vm86_vm1, %v656_v39, 0.0  ;;  %v670_v44 = vrot.slane %v669_v42, 4 }
  0x29   :  { %1020 = vmatprep.subr.mxu0 %v1154_v1  ;;  %v658_v43 = vrot.slane %v657_v41, 4 }
  0x2a   :  { %1021 = vmatpush3.msra.mxu0 %v54_v3  ;;  %v671_v46 = vadd.f32 %v670_v44, %v669_v42 }
  0x2b   :  { %1022 = vmatprep.subr.mxu0 %v1154_v1  ;;  %v659_v45 = vadd.f32 %v658_v43, %v657_v41 }
  0x2c   :  { %1023 = vmatpush3.msra.mxu0 %v53_v4  ;;  %v672_v48 = vrot.slane %v671_v46, 2 }
  0x2d   :  { %1043 = vmatprep.subr.mxu0 %v1154_v1  ;;  %v660_v47 = vrot.slane %v659_v45, 2 }
  0x2e   :  { %v673_v50 = vadd.f32 %v672_v48, %v671_v46 }
  0x2f   :  { %v661_v49 = vadd.f32 %v660_v47, %v659_v45 }
  0x30   :  { %v674_v54 = vrot.slane %v673_v50, 1 }
  0x31   :  { %v662_v53 = vrot.slane %v661_v49, 1 }
  0x32   :  { %v675_v60 = vadd.f32 %v674_v54, %v673_v50 }
  0x33   :  { %v663_v59 = vadd.f32 %v662_v53, %v661_v49 }
  0x35   :  { %v676_v63 = vsub.f32 %v663_v59, %v675_v60 }
  0xe5   :  { %v156_v6 = vpop.f32.mrf.mxu0 }
  0xe6   :  { %v161_v7 = vmul.f32 0.70710677, %v156_v6  ;;  %v160_v10 = vmul.f32 0.5, %v156_v6 }
  0xe7   :  { %v999_v8 = vpop.f32.mrf.mxu0 }
  0xe8   :  { %1082 = verf.f32 %v161_v7 }
  0xf5   :  { %v1083_v9 = vpop.eup %1082 }
  0xf6   :  { %v163_v11 = vadd.f32 1.0, %v1083_v9 }
  0xf8   :  { %v164_v12 = vmul.f32 %v163_v11, %v160_v10  ;;  %v76_v11 = vld [vmem:[#allocation6 + $0x98] sm:$0xff] }
  0xfa   :  { %1001 = vmatpush3.msra.mxu1 %v164_v12  ;;  %v75_v12 = vld [vmem:[#allocation6 + $0x90] sm:$0xff] }
  0xfb   :  { %1003 = vmatmul.mubr.msk.f32.vlgmr.msra.gmra.mxu1 %vm165_vm2, %v51_v13  ;;  %1005 = vmatprep.subr.mxu1 %v1154_v1 }
  0xfc   :  { %1006 = vmatpush3.msra.mxu1 %v61_v14  ;;  %1013 = vmatprep.mubr.msk.f32.mxu1 %vm1155_vm0, %v1154_v1 }
  0xfd   :  { %1007 = vmatprep.subr.mxu1 %v1154_v1 }
  0xfe   :  { %1008 = vmatpush3.msra.mxu1 %v60_v15 }
  0xff   :  { %1009 = vmatprep.subr.mxu1 %v1154_v1 }
 0x100   :  { %1010 = vmatpush3.msra.mxu1 %v59_v16 }
 0x101   :  { %1011 = vmatprep.subr.mxu1 %v1154_v1 }
 0x102   :  { %1012 = vmatpush3.msra.mxu1 %v58_v17 }
 0x103   :  { %1014 = vmatmul.mubr.msk.f32.vlgmr.msra.gmra.mxu1 %vm86_vm1, %v1212_v5  ;;  %1027 = vmatprep.subr.mxu1 %v1154_v1 }
 0x104   :  { %1029 = vmatprep.mubr.msk.f32.mxu1 %vm1155_vm0, %v1154_v1 }
 0x1bb   :  { %v235_v18 = vpop.f32.mrf.mxu1 }
 0x1bd   :  { %v1004_v19 = vpop.f32.mrf.mxu1 }
 0x1c3   :  { %v305_v20 = vpop.f32.mrf.mxu1 }
 0x1c4   :  { %v306_v21 = vadd.f32 %v305_v20, %v235_v18 }
 0x1c5   :  { %v1015_v22 = vpop.f32.mrf.mxu1 }
 0x1c6   :  { %v310_v23 = vmul.f32 0.70710677, %v306_v21  ;;  %v309_v25 = vmul.f32 0.5, %v306_v21 }
 0x1c8   :  { %1084 = verf.f32 %v310_v23 }
 0x1d5   :  { %v1085_v24 = vpop.eup %1084 }
 0x1d6   :  { %v312_v26 = vadd.f32 1.0, %v1085_v24 }
 0x1d8   :  { %v313_v27 = vmul.f32 %v312_v26, %v309_v25 }
 0x1da   :  { %1025 = vmatmul.mubr.msk.f32.vlgmr.msra.gmra.mxu0 %vm86_vm1, %v313_v27 }
 0x1db   :  { %1051 = vmatprep.mubr.msk.f32.mxu0 %vm1155_vm0, %v1154_v1  ;;  %1044 = vmatpush3.msra.mxu0 %v66_v51 }
 0x1dc   :  { %1045 = vmatprep.subr.mxu0 %v1154_v1 }
 0x1dd   :  { %1046 = vmatpush3.msra.mxu0 %v65_v52 }
 0x1de   :  { %1047 = vmatprep.subr.mxu0 %v1154_v1 }
 0x1df   :  { %1048 = vmatpush3.msra.mxu0 %v64_v55 }
 0x1e0   :  { %1049 = vmatprep.subr.mxu0 %v1154_v1 }
 0x1e1   :  { %1050 = vmatpush3.msra.mxu0 %v63_v57 }
 0x1e2   :  { %1065 = vmatprep.subr.mxu0 %v1154_v1 }
 0x29a   :  { %v383_v28 = vpop.f32.mrf.mxu0 }
 0x29b   :  { %v388_v29 = vmul.f32 0.70710677, %v383_v28  ;;  %v387_v32 = vmul.f32 0.5, %v383_v28 }
 0x29c   :  { %v1026_v30 = vpop.f32.mrf.mxu0 }
 0x29d   :  { %1086 = verf.f32 %v388_v29 }
 0x2aa   :  { %v1087_v31 = vpop.eup %1086 }
 0x2ab   :  { %v390_v33 = vadd.f32 1.0, %v1087_v31 }
 0x2ad   :  { %v391_v34 = vmul.f32 %v390_v33, %v387_v32 }
 0x2af   :  { %1028 = vmatpush3.msra.mxu1 %v391_v34 }
 0x2b0   :  { %1032 = vmatprep.subr.mxu1 %v1154_v1  ;;  %1030 = vmatmul.mubr.msk.f32.vlgmr.msra.gmra.mxu1 %vm165_vm2, %v51_v13  ;;  %v74_v13 = vld [vmem:[#allocation6 + $0x88] sm:$0xff] }
 0x2b1   :  { %1033 = vmatpush3.msra.mxu1 %v61_v14  ;;  %1040 = vmatprep.mubr.msk.f32.mxu1 %vm1155_vm0, %v1154_v1  ;;  %v73_v14 = vld [vmem:[#allocation6 + $0x80] sm:$0xff] }
 0x2b2   :  { %1034 = vmatprep.subr.mxu1 %v1154_v1 }
 0x2b3   :  { %1035 = vmatpush3.msra.mxu1 %v60_v15 }
 0x2b4   :  { %1036 = vmatprep.subr.mxu1 %v1154_v1 }
 0x2b5   :  { %1037 = vmatpush3.msra.mxu1 %v59_v16 }
 0x2b6   :  { %1038 = vmatprep.subr.mxu1 %v1154_v1 }
 0x2b7   :  { %1039 = vmatpush3.msra.mxu1 %v58_v17 }
 0x2b8   :  { %1041 = vmatmul.mubr.msk.f32.vlgmr.msra.gmra.mxu1 %vm86_vm1, %v313_v27  ;;  %1054 = vmatprep.subr.mxu1 %v1154_v1 }
 0x2b9   :  { %1062 = vmatprep.mubr.msk.f32.mxu1 %vm1155_vm0, %v1154_v1  ;;  %1055 = vmatpush3.msra.mxu1 %v71_v56 }
 0x2ba   :  { %1056 = vmatprep.subr.mxu1 %v1154_v1 }
 0x2bb   :  { %1057 = vmatpush3.msra.mxu1 %v70_v58 }
 0x2bc   :  { %1058 = vmatprep.subr.mxu1 %v1154_v1 }
 0x2bd   :  { %1059 = vmatpush3.msra.mxu1 %v69_v61 }
 0x2be   :  { %1060 = vmatprep.subr.mxu1 %v1154_v1 }
 0x2bf   :  { %1061 = vmatpush3.msra.mxu1 %v68_v62 }
 0x2c0   :  { %1063 = vmatmul.mubr.msk.f32.vlgmr.msra.gmra.mxu1 %vm86_vm1, %v676_v63 }
 0x370   :  { %v458_v0 = vpop.f32.mrf.mxu1 }
 0x372   :  { %v1031_v2 = vpop.f32.mrf.mxu1 }
 0x378   :  { %v528_v3 = vpop.f32.mrf.mxu1 }
 0x379   :  { %v529_v4 = vadd.f32 %v528_v3, %v458_v0  ;;  %v943_v0 = vld [vmem:[%s1339_s5] ss:$0 sm:$0xff]  ;;  %v944_v3 = vld [vmem:[%s1339_s5 + $0x1] ss:$0 sm:$0xff] }
 0x37a   :  { %v1042_v5 = vpop.f32.mrf.mxu1 }
 0x37b   :  { %v533_v6 = vmul.f32 0.70710677, %v529_v4  ;;  %v532_v8 = vmul.f32 0.5, %v529_v4 }
 0x37d   :  { %1088 = verf.f32 %v533_v6  ;;  %v945_v6 = vld [vmem:[%s1339_s5 + $0x2] ss:$0 sm:$0xff] }
 0x380   :  { %v746_v15 = vpop.f32.mrf.mxu1 }
 0x381   :  { %v751_v17 = vmul.f32 0.70710677, %v746_v15  ;;  %v750_v25 = vmul.f32 0.5, %v746_v15  ;;  %v83_v15 = vld [vmem:[%s1339_s5 + $0x6] sm:$0x1] }
 0x382   :  { %v1064_v16 = vpop.f32.mrf.mxu1 }
 0x383   :  { %1090 = verf.f32 %v751_v17 }
 0x38a   :  { %v1089_v7 = vpop.eup %1088 }
 0x38b   :  { %v535_v9 = vadd.f32 1.0, %v1089_v7  ;;  %v80_v7 = vld [vmem:[%s1339_s5 + $0x3] sm:$0x1] }
 0x38d   :  { %v536_v10 = vmul.f32 %v535_v9, %v532_v8 }
 0x38f   :  { %1052 = vmatmul.mubr.msk.f32.vlgmr.msra.gmra.mxu0 %vm86_vm1, %v536_v10  ;;  %v81_v10 = vld [vmem:[%s1339_s5 + $0x4] sm:$0x1] }
 0x390   :  { %1066 = vmatpush3.msra.mxu0 %v76_v11  ;;  %1073 = vmatprep.mubr.msk.f32.mxu0 %vm1155_vm0, %v1154_v1  ;;  %v1091_v24 = vpop.eup %1090 }
 0x391   :  { %1067 = vmatprep.subr.mxu0 %v1154_v1  ;;  %v753_v26 = vadd.f32 1.0, %v1091_v24 }
 0x392   :  { %1068 = vmatpush3.msra.mxu0 %v75_v12 }
 0x393   :  { %1069 = vmatprep.subr.mxu0 %v1154_v1  ;;  %v754_v30 = vmul.f32 %v753_v26, %v750_v25 }
 0x394   :  { %1070 = vmatpush3.msra.mxu0 %v74_v13 }
 0x395   :  { %1071 = vmatprep.subr.mxu0 %v1154_v1  ;;  %v756_v32 = vsel %vm755_vm5, %v754_v30, 0.0 }
 0x396   :  { %1072 = vmatpush3.msra.mxu0 %v73_v14  ;;  %v82_v14 = vld [vmem:[%s1339_s5 + $0x5] sm:$0x1] }
 0x397   :  { %1074 = vmatmul.mubr.msk.f32.vlgmr.msra.gmra.mxu0 %vm86_vm1, %v676_v63 }
 0x44f   :  { %v606_v18 = vpop.f32.mrf.mxu0 }
 0x450   :  { %v611_v19 = vmul.f32 0.70710677, %v606_v18  ;;  %v610_v1 = vmul.f32 0.5, %v606_v18 }
 0x451   :  { %v1053_v20 = vpop.f32.mrf.mxu0 }
 0x452   :  { %1092 = verf.f32 %v611_v19  ;;  %v84_v19 = vld [vmem:[%s1339_s5 + $0x7] sm:$0x1] }
 0x457   :  { %v841_v21 = vpop.f32.mrf.mxu0 }
 0x458   :  { %v846_v22 = vmul.f32 0.70710677, %v841_v21  ;;  %v845_v34 = vmul.f32 0.5, %v841_v21 }
 0x459   :  { %v1075_v23 = vpop.f32.mrf.mxu0 }
 0x45a   :  { %1094 = verf.f32 %v846_v22  ;;  %v85_v22 = vld [vmem:[%s1339_s5 + $0x8] sm:$0x1] }
 0x45f   :  { %v1093_v27 = vpop.eup %1092 }
 0x460   :  { %v613_v28 = vadd.f32 1.0, %v1093_v27 }
 0x462   :  { %v614_v29 = vmul.f32 %v613_v28, %v610_v1 }
 0x464   :  { %v615_v31 = vsel %vm86_vm1, %v614_v29, 0.0 }
 0x465   :  { %616 = vadd.xlane.f32.xlu0 %v615_v31 }
 0x467   :  { %v1095_v33 = vpop.eup %1094 }
 0x468   :  { %v848_v35 = vadd.f32 1.0, %v1095_v33 }
 0x469   :  { %757 = vadd.xlane.f32.xlu0 %v756_v32 }
 0x46a   :  { %v849_v37 = vmul.f32 %v848_v35, %v845_v34 }
 0x46c   :  { %v850_v38 = vsel %vm755_vm5, %v849_v37, 0.0 }
 0x46d   :  { %851 = vadd.xlane.f32.xlu1 %v850_v38 }
 0x4ee   :  { %v617_v39 = vpop.xlane.xlu0 %616 }
 0x4ef   :  { %v619_v40 = vmul.f32 0.03125, %v617_v39 }
 0x4f1   :  { %v620_v41 = vsub.f32 %v614_v29, %v619_v40 }
 0x4f2   :  { %v758_v42 = vpop.xlane.xlu0 %757 }
 0x4f3   :  { %v759_v43 = vmul.f32 0.03125, %v758_v42  ;;  %v621_v44 = vmul.f32 %v620_v41, %v620_v41 }
 0x4f5   :  { %v760_v45 = vsub.f32 %v754_v30, %v759_v43  ;;  %v622_v46 = vsel %vm86_vm1, %v621_v44, 0.0 }
 0x4f6   :  { %v852_v47 = vpop.xlane.xlu1 %851  ;;  %623 = vadd.xlane.f32.xlu1 %v622_v46 }
 0x4f7   :  { %v853_v48 = vmul.f32 0.03125, %v852_v47  ;;  %v761_v49 = vmul.f32 %v760_v45, %v760_v45 }
 0x4f9   :  { %v854_v50 = vsub.f32 %v849_v37, %v853_v48  ;;  %v762_v51 = vsel %vm755_vm5, %v761_v49, 0.0  ;;  %v888_v48 = vstv %s869_s10 }
 0x4fa   :  { %763 = vadd.xlane.f32.xlu0 %v762_v51  ;;  %vm889_vm6 = vcmp.eq.s32.totalorder %v1253_v36, %v888_v48 }
 0x4fb   :  { %v855_v52 = vmul.f32 %v854_v50, %v854_v50 }
 0x4fd   :  { %v856_v53 = vsel %vm755_vm5, %v855_v52, 0.0  ;;  %v900_v52 = vstv %s1335_s1 }
 0x4fe   :  { %857 = vadd.xlane.f32.xlu1 %v856_v53 }
 0x57f   :  { %v624_v54 = vpop.xlane.xlu1 %623 }
 0x580   :  { %v625_v55 = vmul.f32 0.03125, %v624_v54 }
 0x582   :  { %v626_v56 = vadd.f32 1e-05, %v625_v55 }
 0x583   :  { %v764_v57 = vpop.xlane.xlu0 %763 }
 0x584   :  { %1096 = vrsqrt.f32 %v626_v56  ;;  %v765_v58 = vmul.f32 0.03125, %v764_v57 }
 0x586   :  { %v766_v59 = vadd.f32 1e-05, %v765_v58 }
 0x587   :  { %v858_v60 = vpop.xlane.xlu1 %857 }
 0x588   :  { %1098 = vrsqrt.f32 %v766_v59  ;;  %v859_v61 = vmul.f32 0.03125, %v858_v60 }
 0x58a   :  { %v860_v62 = vadd.f32 1e-05, %v859_v61 }
 0x58c   :  { %1100 = vrsqrt.f32 %v860_v62 }
 0x591   :  { %v1097_v63 = vpop.eup %1096 }
 0x592   :  { %v628_v2 = vmul.f32 %v1097_v63, %v620_v41 }
 0x594   :  { %v633_v4 = vmul.f32 %v943_v0, %v628_v2 }
 0x595   :  { %v1099_v5 = vpop.eup %1098 }
 0x596   :  { %v638_v8 = vadd.f32 %v944_v3, %v633_v4  ;;  %v768_v9 = vmul.f32 %v1099_v5, %v760_v45 }
 0x598   :  { %v643_v11 = vmul.f32 %v945_v6, %v638_v8  ;;  %v769_v12 = vmul.f32 %v768_v9, %v80_v7 }
 0x599   :  { %v1101_v13 = vpop.eup %1100 }
 0x59a   :  { %v644_v16 = vsel %vm86_vm1, %v643_v11, 0.0  ;;  %v770_v17 = vadd.f32 %v769_v12, %v81_v10  ;;  %v862_v18 = vmul.f32 %v1101_v13, %v854_v50 }
 0x59b   :  { %645 = vadd.xlane.f32.xlu0 %v644_v16 }
 0x59c   :  { %v771_v20 = vmul.f32 %v770_v17, %v82_v14  ;;  %v863_v21 = vmul.f32 %v862_v18, %v83_v15 }
 0x59e   :  { %v772_v23 = vsel %vm755_vm5, %v771_v20, 0.0  ;;  %v864_v24 = vadd.f32 %v863_v21, %v84_v19 }
 0x59f   :  { %773 = vadd.xlane.f32.xlu1 %v772_v23 }
 0x5a0   :  { %v865_v25 = vmul.f32 %v864_v24, %v85_v22 }
 0x5a2   :  { %v866_v26 = vsel %vm755_vm5, %v865_v25, 0.0 }
 0x5a3   :  { %867 = vadd.xlane.f32.xlu0 %v866_v26 }
 0x624   :  { %v646_v27 = vpop.xlane.xlu0 %645 }
 0x625   :  { %647 = vst [vmem:[%s1340_s6] sm:$0xff] %v646_v27  ;;  %v870_v1 = vrot.slane %v646_v27, 4  ;;  %v890_v54 = vsel %vm889_vm6, %v646_v27, 0.0 }
 0x626   :  { %v891_v59 = vrot.slane %v890_v54, 4 }
 0x627   :  { %v871_v28 = vmax.f32 %v646_v27, %v870_v1 }
 0x628   :  { %v774_v29 = vpop.xlane.xlu1 %773  ;;  %v892_v36 = vadd.f32 %v891_v59, %v890_v54 }
 0x629   :  { %v872_v30 = vrot.slane %v871_v28, 2  ;;  %v903_v31 = vand.u32 2147483647, %v774_v29  ;;  %924 = vst [vmem:[%s1340_s6 + $0x8] sm:$0x1] %v774_v29  ;;  %v899_v56 = vmax.f32 %v774_v29, 0.0  ;;  %v901_v57 = vmul.f32 %v900_v52, %v774_v29 }
 0x62a   :  { %v893_v8 = vrot.slane %v892_v36, 2 }
 0x62b   :  { %v873_v32 = vmax.f32 %v871_v28, %v872_v30  ;;  %v904_v33 = vsub.f32 0.0, %v903_v31  ;;  %v902_v62 = vsub.f32 %v899_v56, %v901_v57 }
 0x62c   :  { %v868_v34 = vpop.xlane.xlu0 %867  ;;  %v894_v11 = vadd.f32 %v893_v8, %v892_v36 }
 0x62d   :  { %v874_v35 = vrot.slane %v873_v32, 1  ;;  %v905_v37 = vmul.f32 1.442695, %v904_v33  ;;  %925 = vst [vmem:[%s1340_s6 + $0x9] sm:$0x1] %v868_v34  ;;  %v912_v0 = vmax.f32 %v868_v34, 0.0  ;;  %v913_v2 = vmul.f32 %v900_v52, %v868_v34 }
 0x62e   :  { %v915_v38 = vand.u32 2147483647, %v868_v34  ;;  %v895_v12 = vrot.slane %v894_v11, 1 }
 0x62f   :  { %v875_v39 = vmax.f32 %v873_v32, %v874_v35  ;;  %1102 = vpow2.f32 %v905_v37  ;;  %v914_v6 = vsub.f32 %v912_v0, %v913_v2 }
 0x630   :  { %v916_v40 = vsub.f32 0.0, %v915_v38  ;;  %v896_v16 = vadd.f32 %v895_v12, %v894_v11 }
 0x631   :  { %v876_v41 = vsub.f32 %v646_v27, %v875_v39 }
 0x632   :  { %v917_v42 = vmul.f32 1.442695, %v916_v40 }
 0x633   :  { %v877_v43 = vmul.f32 1.442695, %v876_v41 }
 0x634   :  { %1104 = vpow2.f32 %v917_v42 }
 0x635   :  { %1106 = vpow2.f32 %v877_v43 }
 0x63c   :  { %v1103_v44 = vpop.eup %1102 }
 0x63d   :  { %v907_v45 = vadd.f32 1.0, %v1103_v44 }
 0x63f   :  { %1108 = vlog2.f32 %v907_v45 }
 0x641   :  { %v1105_v46 = vpop.eup %1104 }
 0x642   :  { %v1107_v47 = vpop.eup %1106  ;;  %v919_v49 = vadd.f32 1.0, %v1105_v46 }
 0x643   :  { %v879_v50 = vrot.slane %v1107_v47, 4 }
 0x644   :  { %1110 = vlog2.f32 %v919_v49 }
 0x645   :  { %v880_v51 = vadd.f32 %v1107_v47, %v879_v50 }
 0x647   :  { %v881_v53 = vrot.slane %v880_v51, 2 }
 0x649   :  { %v882_v55 = vadd.f32 %v881_v53, %v880_v51 }
 0x64b   :  { %v883_v58 = vrot.slane %v882_v55, 1 }
 0x64c   :  { %v1109_v60 = vpop.eup %1108 }
 0x64d   :  { %v884_v61 = vadd.f32 %v883_v58, %v882_v55  ;;  %v909_v63 = vmul.f32 0.6931472, %v1109_v60 }
 0x64f   :  { %1112 = vlog2.f32 %v884_v61  ;;  %v910_v3 = vadd.f32 %v909_v63, %v902_v62 }
 0x651   :  { %v1111_v4 = vpop.eup %1110  ;;  %v911_v5 = vmul.f32 0.2, %v910_v3 }
 0x652   :  { %v921_v7 = vmul.f32 0.6931472, %v1111_v4 }
 0x653   :  { %927 = vst [vmem:[%s1340_s6 + $0xb] sm:$0x1] %v911_v5 }
 0x654   :  { %v922_v9 = vadd.f32 %v921_v7, %v914_v6 }
 0x656   :  { %v923_v10 = vmul.f32 0.2, %v922_v9 }
 0x658   :  { %928 = vst [vmem:[%s1340_s6 + $0xc] sm:$0x1] %v923_v10 }
 0x65c   :  { %v1113_v13 = vpop.eup %1112 }
 0x65d   :  { %v886_v14 = vmul.f32 0.6931472, %v1113_v13 }
 0x65f   :  { %v887_v15 = vadd.f32 %v886_v14, %v875_v39 }
 0x661   :  { %v897_v17 = vsub.f32 %v887_v15, %v896_v16 }
 0x663   :  { %926 = vst [vmem:[%s1340_s6 + $0xa] sm:$0x1] %v897_v17 }
 0x664   :  { %934 = vsyncpa [#allocation4], 1 }
 0x665   :  { %935 = vsyncpa [#allocation5], 1 }

</bundles_post_ra>
